<compile_context>
chip_gen: v7x
topology: tpu7x:2x2x1
jax: 0.10.0
libtpu: 0.0.40
codegen_flags: <defaults>
</compile_context>

<pallas_src>
import functools

import jax
import jax.numpy as jnp
from jax.experimental import pallas as pl
from jax.experimental.pallas import tpu as pltpu


def _mlp_kernel(x_ref, w1_ref, b1_ref, w2_ref, b2_ref, o_ref, acc_ref):
    j = pl.program_id(1)                     # intermediate-dim (reduction) step

    @pl.when(j == 0)
    def _():
        acc_ref[...] = jnp.zeros_like(acc_ref)

    x = x_ref[...]
    # fc1 partial: [TM, H] @ [H, TI] -> f32
    h = jnp.dot(x, w1_ref[...], preferred_element_type=jnp.float32)
    h = h + b1_ref[...].astype(jnp.float32)
    # SiLU in f32 (EUP sigmoid + VPU mul)
    h = h * jax.nn.sigmoid(h)
    # fc2 partial: [TM, TI] @ [TI, H] accumulated in f32
    acc_ref[...] += jnp.dot(h.astype(x.dtype), w2_ref[...],
                            preferred_element_type=jnp.float32)

    @pl.when(j == pl.num_programs(1) - 1)
    def _():
        out = acc_ref[...] + b2_ref[...].astype(jnp.float32)
        o_ref[...] = out.astype(o_ref.dtype)


def _round_up(a, b):
    return ((a + b - 1) // b) * b


@functools.partial(jax.jit, static_argnames=("tm", "ti"))
def mlp_pallas(x, w1, b1, w2, b2, *, tm=256, ti=512):
    """x: [B, S, H];  w1: [H, I], b1: [I];  w2: [I, H], b2: [H]."""
    B, S, H = x.shape
    I = w1.shape[1]
    M = B * S
    x2d = x.reshape(M, H)

    # ---- tile selection -----------------------------------------------------
    # TM: multiple of 16 (covers f32 (8) and bf16 (16) sublane packing).
    TM = min(tm, _round_up(M, 16))
    # TI: multiple of 128 (lane width) unless the whole I dim fits in one tile.
    TI = I if I <= ti else ti

    # ---- pad so every grid block is full (zero-padding is exact for this op:
    # silu(0)=0 and zero rows/cols of w2/w1 contribute nothing) ---------------
    Mp = pl.cdiv(M, TM) * TM
    Ip = pl.cdiv(I, TI) * TI
    if Mp != M:
        x2d = jnp.pad(x2d, ((0, Mp - M), (0, 0)))
    if Ip != I:
        w1 = jnp.pad(w1, ((0, 0), (0, Ip - I)))
        b1 = jnp.pad(b1, ((0, Ip - I),))
        w2 = jnp.pad(w2, ((0, Ip - I), (0, 0)))
    b1_2d = b1.reshape(1, Ip)
    b2_2d = b2.reshape(1, H)

    grid = (Mp // TM, Ip // TI)

    # ---- VMEM budget / compiler params --------------------------------------
    ib = x.dtype.itemsize
    wb = w1.dtype.itemsize
    est_vmem = (2 * TM * H * ib            # x tiles (double-buffered)
                + 2 * TM * H * ib          # out tiles
                + 2 * H * TI * wb          # w1 tiles
                + 2 * TI * H * wb          # w2 tiles
                + 2 * (TI + H) * wb        # biases
                + TM * H * 4               # f32 accumulator scratch
                + TM * TI * 4)             # f32 intermediate live in-regs/VMEM
    # Clamp: >=32 MiB (default scoped), <=100 MiB (stay under v6e physical;
    # at these tile sizes actual use also fits v7x's 64 MiB).
    vmem_limit = max(32 << 20, min(int(2 * est_vmem), 100 << 20))

    cost = pl.CostEstimate(
        flops=4 * M * H * I + 3 * M * I,
        transcendentals=M * I,
        bytes_accessed=(M * H * ib * 2 + H * I * wb * 2 + (I + H) * wb),
    )

    out2d = pl.pallas_call(
        _mlp_kernel,
        out_shape=jax.ShapeDtypeStruct((Mp, H), x.dtype),
        grid_spec=pltpu.PrefetchScalarGridSpec(
            num_scalar_prefetch=0,
            grid=grid,
            in_specs=[
                pl.BlockSpec((TM, H), lambda i, j: (i, 0)),   # x tile
                pl.BlockSpec((H, TI), lambda i, j: (0, j)),   # w1 slab
                pl.BlockSpec((1, TI), lambda i, j: (0, j)),   # b1 slab
                pl.BlockSpec((TI, H), lambda i, j: (j, 0)),   # w2 slab
                pl.BlockSpec((1, H), lambda i, j: (0, 0)),    # b2
            ],
            out_specs=pl.BlockSpec((TM, H), lambda i, j: (i, 0)),
            scratch_shapes=[pltpu.VMEM((TM, H), jnp.float32)],
        ),
        compiler_params=pltpu.CompilerParams(
            dimension_semantics=("parallel", "arbitrary"),
            vmem_limit_bytes=vmem_limit,
        ),
        cost_estimate=cost,
    )(x2d, w1, b1_2d, w2, b2_2d)

    return out2d[:M].reshape(B, S, H)


def init_mlp_params(key, hidden_size, intermediate_size, dtype=jnp.float32):
    """Deterministic init mimicking nn.Linear's uniform(-1/sqrt(fan_in), ...)."""
    k1, k2, k3, k4 = jax.random.split(key, 4)
    bound1 = 1.0 / (hidden_size ** 0.5)
    bound2 = 1.0 / (intermediate_size ** 0.5)
    # stored transposed ([in, out]) for direct matmul in the kernel
    w1 = jax.random.uniform(k1, (hidden_size, intermediate_size), dtype,
                            minval=-bound1, maxval=bound1)
    b1 = jax.random.uniform(k2, (intermediate_size,), dtype,
                            minval=-bound1, maxval=bound1)
    w2 = jax.random.uniform(k3, (intermediate_size, hidden_size), dtype,
                            minval=-bound2, maxval=bound2)
    b2 = jax.random.uniform(k4, (hidden_size,), dtype,
                            minval=-bound2, maxval=bound2)
    return w1, b1, w2, b2


if __name__ == "__main__":
    key = jax.random.PRNGKey(0)
    kx, kp = jax.random.split(key)

    # Small shapes consistent with the module.  Note: H=32 / I=64 are below the
    # 128-lane width, so stores are masked and MXU utilization is tiny here;
    # for production pick H, I as multiples of 128/256 and pass bf16 inputs.
    batch, seq, hidden, intermediate = 2, 8, 32, 64
    x = jax.random.normal(kx, (batch, seq, hidden), dtype=jnp.float32)
    w1, b1, w2, b2 = init_mlp_params(kp, hidden, intermediate)

    out = mlp_pallas(x, w1, b1, w2, b2)
    out = jax.block_until_ready(out)

    # reference check in plain JAX
    h_ref = x @ w1 + b1
    h_ref = h_ref * jax.nn.sigmoid(h_ref)
    ref = h_ref @ w2 + b2
    assert out.shape == (batch, seq, hidden)
    assert jnp.allclose(out, ref, atol=1e-5, rtol=1e-5)

    print("KERNEL_OK")
</pallas_src>

<mosaic_0001>
module attributes {stable_mosaic.version = 11 : i64} {
  func.func @_mlp_kernel(%arg0: i32, %arg1: i32, %arg2: memref<16x32xf32, #tpu.memory_space<vmem>>, %arg3: memref<32x64xf32, #tpu.memory_space<vmem>>, %arg4: memref<1x64xf32, #tpu.memory_space<vmem>>, %arg5: memref<64x32xf32, #tpu.memory_space<vmem>>, %arg6: memref<1x32xf32, #tpu.memory_space<vmem>>, %arg7: memref<16x32xf32, #tpu.memory_space<vmem>>, %arg8: memref<16x32xf32, #tpu.memory_space<vmem>>) attributes {dimension_semantics = [#tpu.dimension_semantics<parallel>, #tpu.dimension_semantics<arbitrary>], iteration_bounds = array<i64: 1, 1>, scalar_prefetch = 0 : i64, scratch_operands = 1 : i64, tpu.core_type = #tpu.core_type<tc>, window_params = [{transform_indices = @transform_0, window_bounds = array<i64: 16, 32>}, {transform_indices = @transform_1, window_bounds = array<i64: 32, 64>}, {transform_indices = @transform_2, window_bounds = array<i64: 1, 64>}, {transform_indices = @transform_3, window_bounds = array<i64: 64, 32>}, {pipeline_mode = #tpu.pipeline_mode<synchronous>, transform_indices = @transform_4, window_bounds = array<i64: 1, 32>}, {transform_indices = @transform_5, window_bounds = array<i64: 16, 32>}]} {
    %c0_i32 = arith.constant 0 : i32
    %0 = arith.cmpi eq, %arg1, %c0_i32 : i32
    %1 = arith.extui %0 : i1 to i32
    %c0_i32_0 = arith.constant 0 : i32
    %2 = arith.cmpi ne, %1, %c0_i32_0 : i32
    scf.if %2 {
      %cst_16 = arith.constant 0.000000e+00 : f32
      %23 = vector.broadcast %cst_16 : f32 to vector<16x32xf32>
      %c0_17 = arith.constant 0 : index
      %c0_18 = arith.constant 0 : index
      %24 = vector.load %arg8[%c0_17, %c0_18] : memref<16x32xf32, #tpu.memory_space<vmem>>, vector<16x32xf32>
      tpu.vector_store %arg8[%c0_17, %c0_18], %23 {strides = array<i32>} : memref<16x32xf32, #tpu.memory_space<vmem>>, vector<16x32xf32>,
    } else {
    }
    %c0 = arith.constant 0 : index
    %c0_1 = arith.constant 0 : index
    %3 = vector.load %arg2[%c0, %c0_1] : memref<16x32xf32, #tpu.memory_space<vmem>>, vector<16x32xf32>
    %c0_2 = arith.constant 0 : index
    %c0_3 = arith.constant 0 : index
    %4 = vector.load %arg3[%c0_2, %c0_3] : memref<32x64xf32, #tpu.memory_space<vmem>>, vector<32x64xf32>
    %cst = arith.constant dense<0.000000e+00> : vector<16x64xf32>
    %5 = tpu.matmul %3, %4, %cst {dimension_numbers = #tpu.dot_dimension_numbers<[1], [0], [0], [1], [0, 0, 1, 1], [], []>} : vector<16x32xf32>, vector<32x64xf32>, vector<16x64xf32> -> vector<16x64xf32>
    %c0_4 = arith.constant 0 : index
    %c0_5 = arith.constant 0 : index
    %6 = vector.load %arg4[%c0_4, %c0_5] : memref<1x64xf32, #tpu.memory_space<vmem>>, vector<1x64xf32>
    %7 = vector.broadcast %6 : vector<1x64xf32> to vector<16x64xf32>
    %8 = arith.addf %5, %7 : vector<16x64xf32>
    %9 = arith.negf %8 : vector<16x64xf32>
    %10 = math.exp %9 : vector<16x64xf32>
    %cst_6 = arith.constant 1.000000e+00 : f32
    %11 = vector.broadcast %cst_6 : f32 to vector<16x64xf32>
    %12 = arith.addf %11, %10 : vector<16x64xf32>
    %13 = arith.divf %11, %12 : vector<16x64xf32>
    %14 = arith.mulf %8, %13 : vector<16x64xf32>
    %c0_7 = arith.constant 0 : index
    %c0_8 = arith.constant 0 : index
    %15 = vector.load %arg8[%c0_7, %c0_8] : memref<16x32xf32, #tpu.memory_space<vmem>>, vector<16x32xf32>
    %c0_9 = arith.constant 0 : index
    %c0_10 = arith.constant 0 : index
    %16 = vector.load %arg5[%c0_9, %c0_10] : memref<64x32xf32, #tpu.memory_space<vmem>>, vector<64x32xf32>
    %cst_11 = arith.constant dense<0.000000e+00> : vector<16x32xf32>
    %17 = tpu.matmul %14, %16, %cst_11 {dimension_numbers = #tpu.dot_dimension_numbers<[1], [0], [0], [1], [0, 0, 1, 1], [], []>} : vector<16x64xf32>, vector<64x32xf32>, vector<16x32xf32> -> vector<16x32xf32>
    %18 = arith.addf %15, %17 : vector<16x32xf32>
    %c0_12 = arith.constant 0 : index
    %c0_13 = arith.constant 0 : index
    %19 = vector.load %arg8[%c0_12, %c0_13] : memref<16x32xf32, #tpu.memory_space<vmem>>, vector<16x32xf32>
    tpu.vector_store %arg8[%c0_12, %c0_13], %18 {strides = array<i32>} : memref<16x32xf32, #tpu.memory_space<vmem>>, vector<16x32xf32>,
    %c0_i32_14 = arith.constant 0 : i32
    %20 = arith.cmpi eq, %arg1, %c0_i32_14 : i32
    %21 = arith.extui %20 : i1 to i32
    %c0_i32_15 = arith.constant 0 : i32
    %22 = arith.cmpi ne, %21, %c0_i32_15 : i32
    scf.if %22 {
      %c0_16 = arith.constant 0 : index
      %c0_17 = arith.constant 0 : index
      %23 = vector.load %arg8[%c0_16, %c0_17] : memref<16x32xf32, #tpu.memory_space<vmem>>, vector<16x32xf32>
      %c0_18 = arith.constant 0 : index
      %c0_19 = arith.constant 0 : index
      %24 = vector.load %arg6[%c0_18, %c0_19] : memref<1x32xf32, #tpu.memory_space<vmem>>, vector<1x32xf32>
      %25 = vector.broadcast %24 : vector<1x32xf32> to vector<16x32xf32>
      %26 = arith.addf %23, %25 : vector<16x32xf32>
      %c0_20 = arith.constant 0 : index
      %c0_21 = arith.constant 0 : index
      %27 = vector.load %arg7[%c0_20, %c0_21] : memref<16x32xf32, #tpu.memory_space<vmem>>, vector<16x32xf32>
      tpu.vector_store %arg7[%c0_20, %c0_21], %26 {strides = array<i32>} : memref<16x32xf32, #tpu.memory_space<vmem>>, vector<16x32xf32>,
    } else {
    }
    return
  }
  func.func @transform_0(%arg0: i32, %arg1: i32) -> (i32, i32) {
    %c0_i32 = arith.constant 0 : i32
    %c0_i32_0 = arith.constant 0 : i32
    return %arg0, %c0_i32 : i32, i32
  }
  func.func @transform_1(%arg0: i32, %arg1: i32) -> (i32, i32) {
    %c0_i32 = arith.constant 0 : i32
    %c0_i32_0 = arith.constant 0 : i32
    return %c0_i32, %arg1 : i32, i32
  }
  func.func @transform_2(%arg0: i32, %arg1: i32) -> (i32, i32) {
    %c0_i32 = arith.constant 0 : i32
    %c0_i32_0 = arith.constant 0 : i32
    return %c0_i32, %arg1 : i32, i32
  }
  func.func @transform_3(%arg0: i32, %arg1: i32) -> (i32, i32) {
    %c0_i32 = arith.constant 0 : i32
    %c0_i32_0 = arith.constant 0 : i32
    return %arg1, %c0_i32 : i32, i32
  }
  func.func @transform_4(%arg0: i32, %arg1: i32) -> (i32, i32) {
    %c0_i32 = arith.constant 0 : i32
    %c0_i32_0 = arith.constant 0 : i32
    %c0_i32_1 = arith.constant 0 : i32
    return %c0_i32, %c0_i32_0 : i32, i32
  }
  func.func @transform_5(%arg0: i32, %arg1: i32) -> (i32, i32) {
    %c0_i32 = arith.constant 0 : i32
    %c0_i32_0 = arith.constant 0 : i32
    return %arg0, %c0_i32 : i32, i32
  }
}

</mosaic_0001>

<bundles_post_ra>
// kernel: mlp_pallas.1
= control target key start
LH: loop header
LB: loop body
LE: loop exit
PB: predicated region body
PF: predicated region fallthrough
CT: control target
= control target key end

     0   :  { %vm25_vm0 = vcmask 261120   ;;  %s481_s0 = inlined_call_operand.vmem [shape: f32[16,32], index: 0, kind: input, shape index: {}]   ;;  %s482_s1 = inlined_call_operand.vmem [shape: f32[32,64], index: 1, kind: input, shape index: {}]   ;;  %s483_s2 = inlined_call_operand.vmem [shape: f32[1,64], index: 2, kind: input, shape index: {}]   ;;  %s484_s3 = inlined_call_operand.vmem [shape: f32[64,32], index: 3, kind: input, shape index: {}]   ;;  %s485_s4 = inlined_call_operand.vmem [shape: f32[1,32], index: 4, kind: input, shape index: {}]   ;;  %s486_s5 = inlined_call_operand.hbm [shape: f32[16,32], index: 5, kind: output, shape index: {}]  }
   0x1   :  { %v30_v0 = vld [vmem:[%s482_s1] sm:$0xff]  ;;  %v31_v1 = vld [vmem:[%s482_s1 + $0x8] sm:$0xff]  ;;  %v32_v2 = vld [vmem:[%s482_s1 + $0x10] sm:$0xff] }
   0x2   :  { %v319_v3 = vpack.c.bf16 %v31_v1, %v30_v0  ;;  %v33_v4 = vld [vmem:[%s482_s1 + $0x18] sm:$0xff]  ;;  %v28_v5 = vld [vmem:[%s481_s0] sm:$0xff] }
   0x3   :  { %v323_v6 = vpack.c.bf16 %v33_v4, %v32_v2  ;;  %297 = vmatprep.mubr.msk.f32.mxu0 %vm25_vm0, %v28_v5 }
   0x4   :  { %10 = vsyncpa [#allocation4], 0  ;;  %320 = vmatprep.subr.bf16.mxu0 %v319_v3  ;;  %v29_v7 = vld [vmem:[%s481_s0 + $0x8] sm:$0xff]  ;;  %v139_v8 = vld [vmem:[%s484_s3] sm:$0xff]  ;;  %v379_v20 = vmov 0.0   ;;  %vm147_vm1 = vcmask 523264  }
   0x5   :  { %322 = vmatpush3.bf16.msra.mxu0 %v319_v3  ;;  %v140_v9 = vld [vmem:[%s484_s3 + $0x8] sm:$0xff]  ;;  %v141_v11 = vld [vmem:[%s484_s3 + $0x10] sm:$0xff]  ;;  %v142_v12 = vld [vmem:[%s484_s3 + $0x18] sm:$0xff]  ;;  %27 = vst.msk [vmem:[#allocation2 + $0x8] sm:$0xff] %vm25_vm0, %v379_v20  ;;  %s380_s21 = smov [#allocation3]  }
   0x6   :  { %324 = vmatprep.subr.bf16.mxu0 %v323_v6  ;;  %v327_v10 = vpack.c.bf16 %v140_v9, %v139_v8  ;;  %v331_v13 = vpack.c.bf16 %v142_v12, %v141_v11  ;;  %v143_v14 = vld [vmem:[%s484_s3 + $0x20] sm:$0xff]  ;;  %v144_v15 = vld [vmem:[%s484_s3 + $0x28] sm:$0xff]  ;;  %v145_v17 = vld [vmem:[%s484_s3 + $0x30] sm:$0xff]  ;;  %26 = vst.msk [vmem:[#allocation2] sm:$0xff] %vm25_vm0, %v379_v20  ;;  %s254_s22 = sshll.u32 %s380_s21, 4  ;;  %s255_s22 = int_to_ptr.vmem [resolvable:$true] %s254_s22 }
   0x7   :  { %v335_v16 = vpack.c.bf16 %v144_v15, %v143_v14  ;;  %v146_v18 = vld [vmem:[%s484_s3 + $0x38] sm:$0xff]  ;;  %v265_v21 = vld [vmem:[%s483_s2] ss:$0 sm:$0xff]  ;;  %s355_s23 = scalar_lea.vmem %s255_s22, 256  ;;  %p360_p1 = scmp.lt.s32.totalorder %s255_s22, %s255_s22 }
   0x8   :  { %328 = vmatprep.subr.bf16.mxu1 %v327_v10  ;;  %v339_v19 = vpack.c.bf16 %v146_v18, %v145_v17  ;;  %v272_v42 = vld [vmem:[%s485_s4] ss:$0 sm:$0xff]  ;;  %p356_p0 = scmp.ne.s32.totalorder %s255_s22, %s355_s23  ;;  %p361_p2 = scmp.lt.s32.totalorder %s355_s23, %s355_s23 }
   0x9   :  { %326 = vmatpush3.bf16.msra.mxu0 %v323_v6  ;;  %330 = vmatpush3.bf16.msra.mxu1 %v327_v10 }
   0xa   :  { %332 = vmatprep.subr.bf16.mxu1 %v331_v13  ;;  %p362_p3 = por %p361_p2, %p360_p1 }
   0xc   :  { %298 = vmatmul.mubr.msk.f32.vlgmr.msra.gmra.mrb[0].mxu0 %vm25_vm0, %v29_v7  ;;  %v138_v36 = vld [vmem:[#allocation2 + $0x8] sm:$0xff]  ;;  %p363_p4 = pnand %p362_p3, %p356_p0 }
   0xd   :  { %334 = vmatpush3.bf16.msra.mxu1 %v331_v13  ;;  %v137_v37 = vld [vmem:[#allocation2] sm:$0xff] }
   0xe   :  { %336 = vmatprep.subr.bf16.mxu1 %v335_v16 }
  0x11   :  { %338 = vmatpush3.bf16.msra.mxu1 %v335_v16 }
  0x12   :  { %340 = vmatprep.subr.bf16.mxu1 %v339_v19 }
  0x15   :  { %342 = vmatpush3.bf16.msra.mxu1 %v339_v19 }
  0xdf   :  { %v299_v22 = vpop.f32.mrb[0].mxu0 }
  0xe0   :  { %v120_v23 = vadd.f32 %v299_v22, %v265_v21  ;;  %v114_v24 = vpop.f32.mrb[1].mxu0 }
  0xe1   :  { %v115_v25 = vadd.f32 %v265_v21, %v114_v24 }
  0xe2   :  { %v269_v26 = vmul.f32 -1.442695, %v120_v23 }
  0xe3   :  { %v268_v27 = vmul.f32 -1.442695, %v115_v25 }
  0xe4   :  { %347 = vpow2.f32 %v269_v26 }
  0xe5   :  { %349 = vpow2.f32 %v268_v27 }
  0xee   :  { %v348_v28 = vpop.eup %347 }
  0xef   :  { %v350_v29 = vpop.eup %349  ;;  %v130_v30 = vadd.f32 1.0, %v348_v28 }
  0xf0   :  { %v129_v31 = vadd.f32 1.0, %v350_v29 }
  0xf1   :  { %351 = vrcp.f32 %v130_v30 }
  0xf2   :  { %353 = vrcp.f32 %v129_v31 }
  0xfb   :  { %v352_v32 = vpop.eup %351 }
  0xfc   :  { %v354_v33 = vpop.eup %353  ;;  %v136_v35 = vmul.f32 %v352_v32, %v120_v23 }
  0xfd   :  { %v135_v34 = vmul.f32 %v354_v33, %v115_v25 }
  0xff   :  { %316 = vmatprep.mubr.msk.f32.mxu1 %vm147_vm1, %v135_v34 }
 0x100   :  { %317 = vmatmul.mubr.msk.f32.vlgmr.msra.gmra.mrb[0].mxu1 %vm147_vm1, %v136_v35 }
 0x1d3   :  { %v318_v38 = vpop.f32.mrb[0].mxu1 }
 0x1d4   :  { %v230_v39 = vadd.f32 %v318_v38, %v138_v36  ;;  %v220_v40 = vpop.f32.mrb[1].mxu1 }
 0x1d5   :  { %v229_v41 = vadd.f32 %v220_v40, %v137_v37 }
 0x1d6   :  { %232 = vst.msk [vmem:[#allocation2 + $0x8] sm:$0xff] %vm25_vm0, %v230_v39 }
 0x1d7   :  { %231 = vst.msk [vmem:[#allocation2] sm:$0xff] %vm25_vm0, %v229_v41 }
 0x1dd   :  { %v237_v43 = vld [vmem:[#allocation2 + $0x8] sm:$0xff] }
 0x1de   :  { %v236_v44 = vld [vmem:[#allocation2] sm:$0xff]  ;;  %v246_v45 = vadd.f32 %v272_v42, %v237_v43 }
 0x1df   :  { %v245_v46 = vadd.f32 %v272_v42, %v236_v44 }
 0x1e0   :  { %248 = vst.msk [vmem:[#allocation3 + $0x8] sm:$0xff] %vm25_vm0, %v246_v45 }
 0x1e1   :  { %247 = vst.msk [vmem:[#allocation3] sm:$0xff] %vm25_vm0, %v245_v46 }
 0x1e2   :  { %366 = shalt.err (!%p363_p4)
}
 0x1e3   :  { %s367_s25 = scalar_lea.hbm %s486_s5, 256 }
 0x1e4   :  { %p368_p5 = scmp.ne.s32.totalorder %s486_s5, %s367_s25  ;;  %p371_p6 = scmp.lt.u32.totalorder %s367_s25, %s486_s5 }
 0x1e6   :  { %p373_p7 = pnand %p371_p6, %p368_p5 }
 0x1e8   :  { %376 = shalt.err (!%p373_p7)
}
 0x1e9   :  { %s381_s30 = smov 128   ;;  %s382_s1 = smov 8  }
 0x1ea   :  { %260 = dma.vmem_to_hbm [thread:$0]  %s255_s22, 256, %s486_s5, [#allocation4], %s381_s30, %s381_s30, %s382_s1  }
 0x1eb   :  { %377 = dma.done.wait [#allocation4], 256  }
 0x1ec   :  { %378 = vsyncadd [#allocation4], 4294967040 }
 0x1ed   :  { %264 = vsyncpa [#allocation4], 1 }

</bundles_post_ra>
